<compile_context>
chip_gen: v5e
topology: v5e:2x2
jax: 0.10.0
libtpu: 0.0.40
codegen_flags: <defaults>
</compile_context>

<pallas_src>
import math

import jax
import jax.numpy as jnp
from jax.experimental import pallas as pl
from jax.experimental.pallas import tpu as pltpu

_LANE = 128
_SUBLANE = 8
_NEG_BIG = -1e30  # padded-class bias: exp(-1e30 - m) == 0 exactly in f32


def _round_up(x, m):
    return (x + m - 1) // m * m


def _classifier_kernel(x_ref, w_ref, b_ref, o_ref):
    """One batch tile: logits = x @ W_t + b; log_softmax over the class axis."""
    # MXU matmul with f32 accumulation (inputs may be f32 or bf16).
    logits = jnp.dot(x_ref[...], w_ref[...], preferred_element_type=jnp.float32)
    logits = logits + b_ref[...]                       # [TB, out_p] + [1, out_p]
    # Numerically stable log-softmax over the last (class) axis, all in f32.
    m = jnp.max(logits, axis=-1, keepdims=True)
    shifted = logits - m
    lse = jnp.log(jnp.sum(jnp.exp(shifted), axis=-1, keepdims=True))
    o_ref[...] = (shifted - lse).astype(o_ref.dtype)


def classifier_1(x, weight, bias, *, block_b=512, use_bf16_inputs=False):
    """log_softmax(x @ weight.T + bias, axis=1).

    x:      [B, in_dim]        float32
    weight: [out_dim, in_dim]  (PyTorch nn.Linear layout)
    bias:   [out_dim]
    """
    B, in_dim = x.shape
    out_dim = weight.shape[0]

    # --- lane-dense class axis: pad out_dim up to a multiple of 128 ----------
    out_p = _round_up(out_dim, _LANE)
    pad = out_p - out_dim
    w_t = jnp.asarray(weight, jnp.float32).T                  # [in_dim, out_dim]
    b_f = jnp.asarray(bias, jnp.float32)
    if pad:
        w_p = jnp.pad(w_t, ((0, 0), (0, pad)))                # padded cols = 0
        b_p = jnp.concatenate(
            [b_f, jnp.full((pad,), _NEG_BIG, jnp.float32)]).reshape(1, out_p)
    else:
        w_p = w_t
        b_p = b_f.reshape(1, out_p)

    if use_bf16_inputs:
        x_in = x.astype(jnp.bfloat16)
        w_in = w_p.astype(jnp.bfloat16)
    else:
        x_in = x.astype(jnp.float32)
        w_in = w_p
    in_bytes = jnp.dtype(x_in.dtype).itemsize

    # --- batch tiling so x-in / y-out DMAs pipeline against the MXU ----------
    if B <= block_b:
        tb = B                                  # single tile, full batch
    else:
        tb = max(_SUBLANE, (block_b // _SUBLANE) * _SUBLANE)
    n_b = pl.cdiv(B, tb)

    # --- VMEM budget: resident W + b, double-buffered x & out tiles ----------
    resident = in_dim * out_p * in_bytes + out_p * 4
    per_tile = 2 * tb * in_dim * in_bytes + 2 * tb * out_p * 4
    vmem_limit = int(min(max(2 * (resident + per_tile), 16 << 20), 64 << 20))

    cost = pl.CostEstimate(
        flops=2 * B * in_dim * out_p,
        transcendentals=B * out_p,              # exp in the softmax
        bytes_accessed=(x_in.size * in_bytes + w_in.size * in_bytes
                        + b_p.size * 4 + B * out_p * 4),
    )

    out_padded = pl.pallas_call(
        _classifier_kernel,
        out_shape=jax.ShapeDtypeStruct((B, out_p), jnp.float32),
        grid_spec=pltpu.PrefetchScalarGridSpec(
            num_scalar_prefetch=0,
            grid=(n_b,),
            in_specs=[
                pl.BlockSpec((tb, in_dim), lambda i: (i, 0)),     # x batch tile
                pl.BlockSpec((in_dim, out_p), lambda i: (0, 0)),  # resident W^T
                pl.BlockSpec((1, out_p), lambda i: (0, 0)),       # resident bias
            ],
            out_specs=pl.BlockSpec((tb, out_p), lambda i: (i, 0)),
        ),
        compiler_params=pltpu.CompilerParams(
            dimension_semantics=("parallel",),   # batch tiles are independent
            vmem_limit_bytes=vmem_limit,
        ),
        cost_estimate=cost,
    )(x_in, w_in, b_p)

    # Drop the padded (lane-filler) classes.
    if pad:
        return out_padded[:, :out_dim]
    return out_padded


def init_params(key, in_dim, out_dim):
    # xavier_normal_ for nn.Linear weight [out_dim, in_dim]; bias zero-filled.
    std = math.sqrt(2.0 / (in_dim + out_dim))
    w = jax.random.normal(key, (out_dim, in_dim), dtype=jnp.float32) * std
    b = jnp.zeros((out_dim,), dtype=jnp.float32)
    return w, b


if __name__ == "__main__":
    key = jax.random.PRNGKey(0)
    k_x, k_w = jax.random.split(key)

    B, in_dim, out_dim = 8, 32, 2
    x = jax.random.normal(k_x, (B, in_dim), dtype=jnp.float32)
    w, b = init_params(k_w, in_dim, out_dim)

    out = classifier_1(x, w, b)
    out = jax.block_until_ready(out)

    # Reference in plain JAX (matches F.log_softmax(self.clf(x), dim=1)).
    ref = jax.nn.log_softmax(x @ w.T + b, axis=1)
    assert out.shape == (B, out_dim)
    err = jnp.max(jnp.abs(out - ref))
    assert jnp.allclose(out, ref, atol=1e-5, rtol=1e-5), f"max abs err {err}"

    print("KERNEL_OK")
</pallas_src>

<mosaic_0001>
module attributes {stable_mosaic.version = 11 : i64} {
  func.func @_classifier_kernel(%arg0: i32, %arg1: memref<8x32xf32, #tpu.memory_space<vmem>>, %arg2: memref<32x128xf32, #tpu.memory_space<vmem>>, %arg3: memref<1x128xf32, #tpu.memory_space<vmem>>, %arg4: memref<8x128xf32, #tpu.memory_space<vmem>>) attributes {dimension_semantics = [#tpu.dimension_semantics<parallel>], iteration_bounds = array<i64: 1>, scalar_prefetch = 0 : i64, scratch_operands = 0 : i64, tpu.core_type = #tpu.core_type<tc>, window_params = [{transform_indices = @transform_0, window_bounds = array<i64: 8, 32>}, {pipeline_mode = #tpu.pipeline_mode<synchronous>, transform_indices = @transform_1, window_bounds = array<i64: 32, 128>}, {pipeline_mode = #tpu.pipeline_mode<synchronous>, transform_indices = @transform_2, window_bounds = array<i64: 1, 128>}, {transform_indices = @transform_3, window_bounds = array<i64: 8, 128>}]} {
    %c0 = arith.constant 0 : index
    %c0_0 = arith.constant 0 : index
    %0 = vector.load %arg1[%c0, %c0_0] : memref<8x32xf32, #tpu.memory_space<vmem>>, vector<8x32xf32>
    %c0_1 = arith.constant 0 : index
    %c0_2 = arith.constant 0 : index
    %1 = vector.load %arg2[%c0_1, %c0_2] : memref<32x128xf32, #tpu.memory_space<vmem>>, vector<32x128xf32>
    %cst = arith.constant dense<0.000000e+00> : vector<8x128xf32>
    %2 = tpu.matmul %0, %1, %cst {dimension_numbers = #tpu.dot_dimension_numbers<[1], [0], [0], [1], [0, 0, 1, 1], [], []>} : vector<8x32xf32>, vector<32x128xf32>, vector<8x128xf32> -> vector<8x128xf32>
    %c0_3 = arith.constant 0 : index
    %c0_4 = arith.constant 0 : index
    %3 = vector.load %arg3[%c0_3, %c0_4] : memref<1x128xf32, #tpu.memory_space<vmem>>, vector<1x128xf32>
    %4 = vector.broadcast %3 : vector<1x128xf32> to vector<8x128xf32>
    %5 = arith.addf %2, %4 : vector<8x128xf32>
    %cst_5 = arith.constant dense<0xFF800000> : vector<8xf32>
    %6 = vector.multi_reduction <maximumf>, %5, %cst_5 [1] : vector<8x128xf32> to vector<8xf32>
    %7 = vector.shape_cast %6 : vector<8xf32> to vector<8x1xf32>
    %8 = vector.broadcast %7 : vector<8x1xf32> to vector<8x128xf32>
    %9 = arith.subf %5, %8 : vector<8x128xf32>
    %10 = math.exp %9 : vector<8x128xf32>
    %cst_6 = arith.constant dense<0.000000e+00> : vector<8xf32>
    %11 = vector.multi_reduction <add>, %10, %cst_6 [1] : vector<8x128xf32> to vector<8xf32>
    %12 = vector.shape_cast %11 : vector<8xf32> to vector<8x1xf32>
    %13 = math.log %12 : vector<8x1xf32>
    %14 = vector.broadcast %13 : vector<8x1xf32> to vector<8x128xf32>
    %15 = arith.subf %9, %14 : vector<8x128xf32>
    %c0_7 = arith.constant 0 : index
    %c0_8 = arith.constant 0 : index
    %16 = vector.load %arg4[%c0_7, %c0_8] : memref<8x128xf32, #tpu.memory_space<vmem>>, vector<8x128xf32>
    tpu.vector_store %arg4[%c0_7, %c0_8], %15 {strides = array<i32>} : memref<8x128xf32, #tpu.memory_space<vmem>>, vector<8x128xf32>,
    return
  }
  func.func @transform_0(%arg0: i32) -> (i32, i32) {
    %c0_i32 = arith.constant 0 : i32
    %c0_i32_0 = arith.constant 0 : i32
    return %arg0, %c0_i32 : i32, i32
  }
  func.func @transform_1(%arg0: i32) -> (i32, i32) {
    %c0_i32 = arith.constant 0 : i32
    %c0_i32_0 = arith.constant 0 : i32
    %c0_i32_1 = arith.constant 0 : i32
    return %c0_i32, %c0_i32_0 : i32, i32
  }
  func.func @transform_2(%arg0: i32) -> (i32, i32) {
    %c0_i32 = arith.constant 0 : i32
    %c0_i32_0 = arith.constant 0 : i32
    %c0_i32_1 = arith.constant 0 : i32
    return %c0_i32, %c0_i32_0 : i32, i32
  }
  func.func @transform_3(%arg0: i32) -> (i32, i32) {
    %c0_i32 = arith.constant 0 : i32
    %c0_i32_0 = arith.constant 0 : i32
    return %arg0, %c0_i32 : i32, i32
  }
}

</mosaic_0001>

<bundles_post_ra>
// kernel: tpu_custom_call.1
= control target key start
LH: loop header
LB: loop body
LE: loop exit
PB: predicated region body
PF: predicated region fallthrough
CT: control target
= control target key end

     0   :  { %8 = vsyncpa [#allocation3], 0  ;;  %s233_s0 = inlined_call_operand.hbm [shape: f32[8,32], index: 0, kind: input, shape index: {}]   ;;  %s234_s1 = inlined_call_operand.hbm [shape: f32[32,128], index: 1, kind: input, shape index: {}]   ;;  %s235_s2 = inlined_call_operand.vmem [shape: f32[1,128], index: 2, kind: input, shape index: {}]   ;;  %s236_s3 = inlined_call_operand.hbm [shape: f32[8,128], index: 3, kind: output, shape index: {}]  }
   0x1   :  { %9 = vsyncpa [#allocation6], 0 }
   0x2   :  { %10 = vsyncpa [#allocation4], 0  ;;  %s16_s14 = sshll.u32 %s233_s0, 4  ;;  %s196_s15 = smov [#allocation2]   ;;  %s17_s14 = int_to_ptr.hbm [resolvable:$true] %s16_s14 }
   0x3   :  { %s18_s16 = sshll.u32 %s196_s15, 4  ;;  %s26_s19 = sshll.u32 %s234_s1, 4  ;;  %s19_s16 = int_to_ptr.vmem [resolvable:$true] %s18_s16  ;;  %s27_s19 = int_to_ptr.hbm [resolvable:$true] %s26_s19 }
   0x4   :  { %21 = dma.hbm_to_vmem [thread:$0]  %s17_s14, 128, %s19_s16, [#allocation3]  }
   0x5   :  { %s197_s20 = smov [#allocation5]   ;;  %s198_s22 = smov 128  }
   0x6   :  { %s28_s21 = sshll.u32 %s197_s20, 4  ;;  %s199_s23 = smov 8   ;;  %s29_s21 = int_to_ptr.vmem [resolvable:$true] %s28_s21 }
   0x7   :  { %34 = dma.hbm_to_vmem [thread:$0]  %s27_s19, 512, %s29_s21, [#allocation6], %s198_s22, %s198_s22, %s199_s23  }
   0x8   :  { %190 = dma.done.wait [#allocation3], 128  }
   0x9   :  { %191 = vsyncadd [#allocation3], 4294967168 }
   0xa   :  { %192 = dma.done.wait [#allocation6], 512  }
   0xb   :  { %193 = vsyncadd [#allocation6], 4294966784  ;;  %v49_v0 = vld [vmem:[#allocation5 + $0x18] sm:$0xff]  ;;  %v48_v1 = vld [vmem:[#allocation5 + $0x10] sm:$0xff]  ;;  %vm54_vm0 = vcmask 261120   ;;  %s200_s24 = smov [#allocation7]  }
   0xc   :  { %70 = vmatpush.msra.mxu0 %v49_v0  ;;  %v47_v2 = vld [vmem:[#allocation5 + $0x8] sm:$0xff]  ;;  %v46_v3 = vld [vmem:[#allocation5] sm:$0xff]  ;;  %v45_v4 = vld [vmem:[#allocation2] sm:$0xff]  ;;  %s94_s25 = sshll.u32 %s200_s24, 4  ;;  %s96_s28 = sshll.u32 %s236_s3, 4  ;;  %s95_s25 = int_to_ptr.vmem [resolvable:$true] %s94_s25  ;;  %s97_s28 = int_to_ptr.hbm [resolvable:$true] %s96_s28 }
   0xd   :  { %v113_v5 = vld [vmem:[%s235_s2] ss:$0 sm:$0xff] }
   0xe   :  { %71 = vmatpush.msra.mxu0 %v48_v1 }
  0x10   :  { %72 = vmatpush.msra.mxu0 %v47_v2 }
  0x12   :  { %73 = vmatpush.msra.mxu0 %v46_v3 }
  0x13   :  { %107 = vmatmul.msk.f32.vlgmr.msra.gmra.mxu0 %vm54_vm0, %v45_v4 }
  0x90   :  { %v75_v6 = vpop.f32.mrf.mxu0 }
  0x91   :  { %v76_v7 = vadd.f32 %v113_v5, %v75_v6 }
  0x93   :  { %78 = vmax.xlane.f32.xlu0 %v76_v7 }
 0x106   :  { %v79_v8 = vpop.xlane.xlu0 %78 }
 0x107   :  { %v80_v9 = vsub.f32 %v76_v7, %v79_v8 }
 0x109   :  { %v81_v10 = vmul.f32 1.442695, %v80_v9 }
 0x10b   :  { %114 = vpow2.f32 %v81_v10 }
 0x111   :  { %v115_v11 = vpop.eup %114 }
 0x112   :  { %83 = vadd.xlane.f32.xlu0 %v115_v11 }
 0x185   :  { %v84_v12 = vpop.xlane.xlu0 %83 }
 0x186   :  { %116 = vlog2.f32 %v84_v12 }
 0x18c   :  { %v117_v13 = vpop.eup %116 }
 0x18d   :  { %v86_v14 = vmul.f32 0.6931472, %v117_v13 }
 0x18f   :  { %v87_v15 = vsub.f32 %v80_v9, %v86_v14 }
 0x191   :  { %88 = vst [vmem:[#allocation7] sm:$0xff] %v87_v15 }
 0x192   :  { %99 = dma.vmem_to_hbm [thread:$0]  %s95_s25, 128, %s97_s28, [#allocation4]  }
 0x193   :  { %194 = dma.done.wait [#allocation4], 128  }
 0x194   :  { %195 = vsyncadd [#allocation4], 4294967168 }
 0x195   :  { %104 = vsyncpa [#allocation3], 1 }
 0x196   :  { %105 = vsyncpa [#allocation6], 1 }
 0x197   :  { %106 = vsyncpa [#allocation4], 1 }

</bundles_post_ra>
